<compile_context>
chip_gen: v7x
topology: tpu7x:2x2x1
jax: 0.10.0
libtpu: 0.0.40
codegen_flags: <defaults>
</compile_context>

<pallas_src>
import functools

import jax
import jax.numpy as jnp
from jax.experimental import pallas as pl
from jax.experimental.pallas import tpu as pltpu

# encoder: 784 -> 128 -> 64 -> 12 -> 5   (ReLU after all but the last)
# decoder: 5 -> 12 -> 64 -> 128 -> 784   (ReLU after all but the last)
LAYER_DIMS = [(784, 128), (128, 64), (64, 12), (12, 5),
              (5, 12), (12, 64), (64, 128), (128, 784)]

_MACS_PER_ROW = sum(fi * fo for fi, fo in LAYER_DIMS)                 # 218744
_PARAM_BYTES = sum(fi * fo * 2 + fo * 4 for fi, fo in LAYER_DIMS)     # bf16 W + f32 b
_IN_DIM = 28 * 28


def autoencoder_kernel(x_ref,
                       w1, b1, w2, b2, w3, b3, w4, b4,
                       w5, b5, w6, b6, w7, b7, w8, b8,
                       out_ref):
    def layer(h_bf16, w_ref, b_ref, relu):
        # bf16 MXU matmul, f32 accumulation; bias-add / ReLU in f32 (v5e has
        # no bf16 VPU).  Caller casts the result back to bf16 for the next
        # layer so inter-layer storage stays half-width.
        acc = jnp.dot(h_bf16, w_ref[...],
                      preferred_element_type=jnp.float32) + b_ref[...]
        if relu:
            acc = jnp.maximum(acc, 0.0)
        return acc

    h = x_ref[...]                                           # bf16
    # encoder
    h = layer(h, w1, b1, True).astype(jnp.bfloat16)
    h = layer(h, w2, b2, True).astype(jnp.bfloat16)
    h = layer(h, w3, b3, True).astype(jnp.bfloat16)
    h = layer(h, w4, b4, False).astype(jnp.bfloat16)         # encoded
    # decoder
    h = layer(h, w5, b5, True).astype(jnp.bfloat16)
    h = layer(h, w6, b6, True).astype(jnp.bfloat16)
    h = layer(h, w7, b7, True).astype(jnp.bfloat16)
    out_ref[...] = layer(h, w8, b8, False).astype(out_ref.dtype)   # decoded


def _round_up(n, m):
    return ((n + m - 1) // m) * m


def _choose_tb(batch, block_batch):
    # At least 2 grid steps when the batch allows (keeps both v7x TCs busy
    # under the "parallel" semantic); tile is a multiple of 8 sublanes.
    tb = _round_up(pl.cdiv(batch, 2), 8)
    return max(8, min(tb, block_batch))


@functools.partial(jax.jit, static_argnames=("block_batch",))
def sparse_autoencoder_forward(x, params, *, block_batch=1024):
    """x: [B, 784] float32 (or bf16).  params: flat list [w1, b1, ..., w8, b8]."""
    B, D = x.shape
    TB = _choose_tb(B, block_batch)
    grid = (pl.cdiv(B, TB),)          # ragged final block handled by Pallas

    # Halve the input HBM traffic: the kernel consumes bf16 anyway.
    x_bf16 = x.astype(jnp.bfloat16)

    # x / out: batch-tiled blocks (last dim = full 784 extent, so the
    # (8,128) lane rule does not apply).  Params: whole-array blocks with a
    # constant index_map -> VMEM-resident across all grid steps.
    x_spec = pl.BlockSpec((TB, D), lambda i: (i, 0))
    out_spec = pl.BlockSpec((TB, D), lambda i: (i, 0))
    param_specs = [pl.BlockSpec(p.shape, lambda i: (0, 0)) for p in params]

    # Size the scoped VMEM limit to the tile (double-buffered bf16 in + f32
    # out + resident params + headroom for the big f32 accumulator), capped
    # at 48 MiB so it always fits v7x's 64 MiB physical VMEM.
    vmem_need = (2 * TB * D * 2            # in tiles (bf16, double-buffered)
                 + 2 * TB * D * 4          # out tiles (f32, double-buffered)
                 + 2 * TB * D * 4          # live f32 accumulator headroom
                 + _PARAM_BYTES
                 + (4 << 20))              # slack
    vmem_limit = min(48 << 20, max(32 << 20, _round_up(vmem_need, 1 << 20)))

    out = pl.pallas_call(
        autoencoder_kernel,
        out_shape=jax.ShapeDtypeStruct((B, D), jnp.float32),
        grid=grid,
        in_specs=[x_spec] + param_specs,
        out_specs=out_spec,
        compiler_params=pltpu.CompilerParams(
            dimension_semantics=("parallel",),
            vmem_limit_bytes=vmem_limit),
        cost_estimate=pl.CostEstimate(
            flops=2 * B * _MACS_PER_ROW,
            transcendentals=0,
            bytes_accessed=B * D * 2 + B * D * 4 + _PARAM_BYTES),
    )(x_bf16, *params)
    return out


def init_params(key):
    """PyTorch-style init U(-1/sqrt(fan_in), 1/sqrt(fan_in)).

    Weights stored as (in, out) bf16 (MXU-native, halves HBM bytes);
    biases stored as (1, out) f32.
    """
    params = []
    for (fan_in, fan_out) in LAYER_DIMS:
        key, kw, kb = jax.random.split(key, 3)
        bound = 1.0 / jnp.sqrt(jnp.float32(fan_in))
        w = jax.random.uniform(kw, (fan_in, fan_out), jnp.float32,
                               minval=-bound, maxval=bound).astype(jnp.bfloat16)
        b = jax.random.uniform(kb, (1, fan_out), jnp.float32,
                               minval=-bound, maxval=bound)
        params.extend([w, b])
    return params


def reference_forward(x, params):
    """Same arithmetic as the kernel: bf16 matmul inputs, f32 accumulate,
    f32 bias/ReLU, bf16 inter-layer storage, f32 final output."""
    h = x.astype(jnp.bfloat16)
    for i in range(8):
        w, b = params[2 * i], params[2 * i + 1]
        acc = jnp.dot(h, w, preferred_element_type=jnp.float32) + b
        if i not in (3, 7):            # no ReLU after encoder tail / decoder tail
            acc = jnp.maximum(acc, 0.0)
        h = acc.astype(jnp.bfloat16) if i < 7 else acc
    return h


if __name__ == "__main__":
    key = jax.random.PRNGKey(0)
    kx, kp = jax.random.split(key)
    B = 50                      # non-multiple batch -> exercises ragged final block
    x = jax.random.normal(kx, (B, _IN_DIM), jnp.float32)
    params = init_params(kp)

    out = sparse_autoencoder_forward(x, params)
    out = jax.block_until_ready(out)

    ref = reference_forward(x, params)
    assert out.shape == (B, _IN_DIM)
    assert out.dtype == jnp.float32
    assert jnp.allclose(out, ref, atol=1e-2, rtol=1e-2), "mismatch vs reference"
    print("KERNEL_OK")
</pallas_src>

<mosaic_0001>
module attributes {stable_mosaic.version = 11 : i64} {
  func.func @autoencoder_kernel(%arg0: i32, %arg1: memref<32x784xbf16, #tpu.memory_space<vmem>>, %arg2: memref<784x128xbf16, #tpu.memory_space<vmem>>, %arg3: memref<1x128xf32, #tpu.memory_space<vmem>>, %arg4: memref<128x64xbf16, #tpu.memory_space<vmem>>, %arg5: memref<1x64xf32, #tpu.memory_space<vmem>>, %arg6: memref<64x12xbf16, #tpu.memory_space<vmem>>, %arg7: memref<1x12xf32, #tpu.memory_space<vmem>>, %arg8: memref<12x5xbf16, #tpu.memory_space<vmem>>, %arg9: memref<1x5xf32, #tpu.memory_space<vmem>>, %arg10: memref<5x12xbf16, #tpu.memory_space<vmem>>, %arg11: memref<1x12xf32, #tpu.memory_space<vmem>>, %arg12: memref<12x64xbf16, #tpu.memory_space<vmem>>, %arg13: memref<1x64xf32, #tpu.memory_space<vmem>>, %arg14: memref<64x128xbf16, #tpu.memory_space<vmem>>, %arg15: memref<1x128xf32, #tpu.memory_space<vmem>>, %arg16: memref<128x784xbf16, #tpu.memory_space<vmem>>, %arg17: memref<1x784xf32, #tpu.memory_space<vmem>>, %arg18: memref<32x784xf32, #tpu.memory_space<vmem>>) attributes {dimension_semantics = [#tpu.dimension_semantics<parallel>], iteration_bounds = array<i64: 2>, scalar_prefetch = 0 : i64, scratch_operands = 0 : i64, tpu.core_type = #tpu.core_type<tc>, window_params = [{transform_indices = @transform_0, window_bounds = array<i64: 32, 784>}, {pipeline_mode = #tpu.pipeline_mode<synchronous>, transform_indices = @transform_1, window_bounds = array<i64: 784, 128>}, {pipeline_mode = #tpu.pipeline_mode<synchronous>, transform_indices = @transform_2, window_bounds = array<i64: 1, 128>}, {pipeline_mode = #tpu.pipeline_mode<synchronous>, transform_indices = @transform_3, window_bounds = array<i64: 128, 64>}, {pipeline_mode = #tpu.pipeline_mode<synchronous>, transform_indices = @transform_4, window_bounds = array<i64: 1, 64>}, {pipeline_mode = #tpu.pipeline_mode<synchronous>, transform_indices = @transform_5, window_bounds = array<i64: 64, 12>}, {pipeline_mode = #tpu.pipeline_mode<synchronous>, transform_indices = @transform_6, window_bounds = array<i64: 1, 12>}, {pipeline_mode = #tpu.pipeline_mode<synchronous>, transform_indices = @transform_7, window_bounds = array<i64: 12, 5>}, {pipeline_mode = #tpu.pipeline_mode<synchronous>, transform_indices = @transform_8, window_bounds = array<i64: 1, 5>}, {pipeline_mode = #tpu.pipeline_mode<synchronous>, transform_indices = @transform_9, window_bounds = array<i64: 5, 12>}, {pipeline_mode = #tpu.pipeline_mode<synchronous>, transform_indices = @transform_10, window_bounds = array<i64: 1, 12>}, {pipeline_mode = #tpu.pipeline_mode<synchronous>, transform_indices = @transform_11, window_bounds = array<i64: 12, 64>}, {pipeline_mode = #tpu.pipeline_mode<synchronous>, transform_indices = @transform_12, window_bounds = array<i64: 1, 64>}, {pipeline_mode = #tpu.pipeline_mode<synchronous>, transform_indices = @transform_13, window_bounds = array<i64: 64, 128>}, {pipeline_mode = #tpu.pipeline_mode<synchronous>, transform_indices = @transform_14, window_bounds = array<i64: 1, 128>}, {pipeline_mode = #tpu.pipeline_mode<synchronous>, transform_indices = @transform_15, window_bounds = array<i64: 128, 784>}, {pipeline_mode = #tpu.pipeline_mode<synchronous>, transform_indices = @transform_16, window_bounds = array<i64: 1, 784>}, {transform_indices = @transform_17, window_bounds = array<i64: 32, 784>}]} {
    %c0 = arith.constant 0 : index
    %c0_0 = arith.constant 0 : index
    %0 = vector.load %arg1[%c0, %c0_0] : memref<32x784xbf16, #tpu.memory_space<vmem>>, vector<32x784xbf16>
    %c0_1 = arith.constant 0 : index
    %c0_2 = arith.constant 0 : index
    %1 = vector.load %arg2[%c0_1, %c0_2] : memref<784x128xbf16, #tpu.memory_space<vmem>>, vector<784x128xbf16>
    %cst = arith.constant dense<0.000000e+00> : vector<32x128xf32>
    %2 = tpu.matmul %0, %1, %cst {dimension_numbers = #tpu.dot_dimension_numbers<[1], [0], [0], [1], [0, 0, 1, 1], [], []>} : vector<32x784xbf16>, vector<784x128xbf16>, vector<32x128xf32> -> vector<32x128xf32>
    %c0_3 = arith.constant 0 : index
    %c0_4 = arith.constant 0 : index
    %3 = vector.load %arg3[%c0_3, %c0_4] : memref<1x128xf32, #tpu.memory_space<vmem>>, vector<1x128xf32>
    %4 = vector.broadcast %3 : vector<1x128xf32> to vector<32x128xf32>
    %5 = arith.addf %2, %4 : vector<32x128xf32>
    %cst_5 = arith.constant 0.000000e+00 : f32
    %6 = vector.broadcast %cst_5 : f32 to vector<32x128xf32>
    %7 = arith.maximumf %5, %6 : vector<32x128xf32>
    %8 = arith.truncf %7 : vector<32x128xf32> to vector<32x128xbf16>
    %c0_6 = arith.constant 0 : index
    %c0_7 = arith.constant 0 : index
    %9 = vector.load %arg4[%c0_6, %c0_7] : memref<128x64xbf16, #tpu.memory_space<vmem>>, vector<128x64xbf16>
    %cst_8 = arith.constant dense<0.000000e+00> : vector<32x64xf32>
    %10 = tpu.matmul %8, %9, %cst_8 {dimension_numbers = #tpu.dot_dimension_numbers<[1], [0], [0], [1], [0, 0, 1, 1], [], []>} : vector<32x128xbf16>, vector<128x64xbf16>, vector<32x64xf32> -> vector<32x64xf32>
    %c0_9 = arith.constant 0 : index
    %c0_10 = arith.constant 0 : index
    %11 = vector.load %arg5[%c0_9, %c0_10] : memref<1x64xf32, #tpu.memory_space<vmem>>, vector<1x64xf32>
    %12 = vector.broadcast %11 : vector<1x64xf32> to vector<32x64xf32>
    %13 = arith.addf %10, %12 : vector<32x64xf32>
    %cst_11 = arith.constant 0.000000e+00 : f32
    %14 = vector.broadcast %cst_11 : f32 to vector<32x64xf32>
    %15 = arith.maximumf %13, %14 : vector<32x64xf32>
    %16 = arith.truncf %15 : vector<32x64xf32> to vector<32x64xbf16>
    %c0_12 = arith.constant 0 : index
    %c0_13 = arith.constant 0 : index
    %17 = vector.load %arg6[%c0_12, %c0_13] : memref<64x12xbf16, #tpu.memory_space<vmem>>, vector<64x12xbf16>
    %cst_14 = arith.constant dense<0.000000e+00> : vector<32x12xf32>
    %18 = tpu.matmul %16, %17, %cst_14 {dimension_numbers = #tpu.dot_dimension_numbers<[1], [0], [0], [1], [0, 0, 1, 1], [], []>} : vector<32x64xbf16>, vector<64x12xbf16>, vector<32x12xf32> -> vector<32x12xf32>
    %c0_15 = arith.constant 0 : index
    %c0_16 = arith.constant 0 : index
    %19 = vector.load %arg7[%c0_15, %c0_16] : memref<1x12xf32, #tpu.memory_space<vmem>>, vector<1x12xf32>
    %20 = vector.broadcast %19 : vector<1x12xf32> to vector<32x12xf32>
    %21 = arith.addf %18, %20 : vector<32x12xf32>
    %cst_17 = arith.constant 0.000000e+00 : f32
    %22 = vector.broadcast %cst_17 : f32 to vector<32x12xf32>
    %23 = arith.maximumf %21, %22 : vector<32x12xf32>
    %24 = arith.truncf %23 : vector<32x12xf32> to vector<32x12xbf16>
    %c0_18 = arith.constant 0 : index
    %c0_19 = arith.constant 0 : index
    %25 = vector.load %arg8[%c0_18, %c0_19] : memref<12x5xbf16, #tpu.memory_space<vmem>>, vector<12x5xbf16>
    %cst_20 = arith.constant dense<0.000000e+00> : vector<32x5xf32>
    %26 = tpu.matmul %24, %25, %cst_20 {dimension_numbers = #tpu.dot_dimension_numbers<[1], [0], [0], [1], [0, 0, 1, 1], [], []>} : vector<32x12xbf16>, vector<12x5xbf16>, vector<32x5xf32> -> vector<32x5xf32>
    %c0_21 = arith.constant 0 : index
    %c0_22 = arith.constant 0 : index
    %27 = vector.load %arg9[%c0_21, %c0_22] : memref<1x5xf32, #tpu.memory_space<vmem>>, vector<1x5xf32>
    %28 = vector.broadcast %27 : vector<1x5xf32> to vector<32x5xf32>
    %29 = arith.addf %26, %28 : vector<32x5xf32>
    %30 = arith.truncf %29 : vector<32x5xf32> to vector<32x5xbf16>
    %c0_23 = arith.constant 0 : index
    %c0_24 = arith.constant 0 : index
    %31 = vector.load %arg10[%c0_23, %c0_24] : memref<5x12xbf16, #tpu.memory_space<vmem>>, vector<5x12xbf16>
    %cst_25 = arith.constant dense<0.000000e+00> : vector<32x12xf32>
    %32 = tpu.matmul %30, %31, %cst_25 {dimension_numbers = #tpu.dot_dimension_numbers<[1], [0], [0], [1], [0, 0, 1, 1], [], []>} : vector<32x5xbf16>, vector<5x12xbf16>, vector<32x12xf32> -> vector<32x12xf32>
    %c0_26 = arith.constant 0 : index
    %c0_27 = arith.constant 0 : index
    %33 = vector.load %arg11[%c0_26, %c0_27] : memref<1x12xf32, #tpu.memory_space<vmem>>, vector<1x12xf32>
    %34 = vector.broadcast %33 : vector<1x12xf32> to vector<32x12xf32>
    %35 = arith.addf %32, %34 : vector<32x12xf32>
    %cst_28 = arith.constant 0.000000e+00 : f32
    %36 = vector.broadcast %cst_28 : f32 to vector<32x12xf32>
    %37 = arith.maximumf %35, %36 : vector<32x12xf32>
    %38 = arith.truncf %37 : vector<32x12xf32> to vector<32x12xbf16>
    %c0_29 = arith.constant 0 : index
    %c0_30 = arith.constant 0 : index
    %39 = vector.load %arg12[%c0_29, %c0_30] : memref<12x64xbf16, #tpu.memory_space<vmem>>, vector<12x64xbf16>
    %cst_31 = arith.constant dense<0.000000e+00> : vector<32x64xf32>
    %40 = tpu.matmul %38, %39, %cst_31 {dimension_numbers = #tpu.dot_dimension_numbers<[1], [0], [0], [1], [0, 0, 1, 1], [], []>} : vector<32x12xbf16>, vector<12x64xbf16>, vector<32x64xf32> -> vector<32x64xf32>
    %c0_32 = arith.constant 0 : index
    %c0_33 = arith.constant 0 : index
    %41 = vector.load %arg13[%c0_32, %c0_33] : memref<1x64xf32, #tpu.memory_space<vmem>>, vector<1x64xf32>
    %42 = vector.broadcast %41 : vector<1x64xf32> to vector<32x64xf32>
    %43 = arith.addf %40, %42 : vector<32x64xf32>
    %cst_34 = arith.constant 0.000000e+00 : f32
    %44 = vector.broadcast %cst_34 : f32 to vector<32x64xf32>
    %45 = arith.maximumf %43, %44 : vector<32x64xf32>
    %46 = arith.truncf %45 : vector<32x64xf32> to vector<32x64xbf16>
    %c0_35 = arith.constant 0 : index
    %c0_36 = arith.constant 0 : index
    %47 = vector.load %arg14[%c0_35, %c0_36] : memref<64x128xbf16, #tpu.memory_space<vmem>>, vector<64x128xbf16>
    %cst_37 = arith.constant dense<0.000000e+00> : vector<32x128xf32>
    %48 = tpu.matmul %46, %47, %cst_37 {dimension_numbers = #tpu.dot_dimension_numbers<[1], [0], [0], [1], [0, 0, 1, 1], [], []>} : vector<32x64xbf16>, vector<64x128xbf16>, vector<32x128xf32> -> vector<32x128xf32>
    %c0_38 = arith.constant 0 : index
    %c0_39 = arith.constant 0 : index
    %49 = vector.load %arg15[%c0_38, %c0_39] : memref<1x128xf32, #tpu.memory_space<vmem>>, vector<1x128xf32>
    %50 = vector.broadcast %49 : vector<1x128xf32> to vector<32x128xf32>
    %51 = arith.addf %48, %50 : vector<32x128xf32>
    %cst_40 = arith.constant 0.000000e+00 : f32
    %52 = vector.broadcast %cst_40 : f32 to vector<32x128xf32>
    %53 = arith.maximumf %51, %52 : vector<32x128xf32>
    %54 = arith.truncf %53 : vector<32x128xf32> to vector<32x128xbf16>
    %c0_41 = arith.constant 0 : index
    %c0_42 = arith.constant 0 : index
    %55 = vector.load %arg16[%c0_41, %c0_42] : memref<128x784xbf16, #tpu.memory_space<vmem>>, vector<128x784xbf16>
    %cst_43 = arith.constant dense<0.000000e+00> : vector<32x784xf32>
    %56 = tpu.matmul %54, %55, %cst_43 {dimension_numbers = #tpu.dot_dimension_numbers<[1], [0], [0], [1], [0, 0, 1, 1], [], []>} : vector<32x128xbf16>, vector<128x784xbf16>, vector<32x784xf32> -> vector<32x784xf32>
    %c0_44 = arith.constant 0 : index
    %c0_45 = arith.constant 0 : index
    %57 = vector.load %arg17[%c0_44, %c0_45] : memref<1x784xf32, #tpu.memory_space<vmem>>, vector<1x784xf32>
    %58 = vector.broadcast %57 : vector<1x784xf32> to vector<32x784xf32>
    %59 = arith.addf %56, %58 : vector<32x784xf32>
    %c0_46 = arith.constant 0 : index
    %c0_47 = arith.constant 0 : index
    %60 = vector.load %arg18[%c0_46, %c0_47] : memref<32x784xf32, #tpu.memory_space<vmem>>, vector<32x784xf32>
    tpu.vector_store %arg18[%c0_46, %c0_47], %59 {strides = array<i32>} : memref<32x784xf32, #tpu.memory_space<vmem>>, vector<32x784xf32>,
    return
  }
  func.func @transform_0(%arg0: i32) -> (i32, i32) {
    %c0_i32 = arith.constant 0 : i32
    %c0_i32_0 = arith.constant 0 : i32
    return %arg0, %c0_i32 : i32, i32
  }
  func.func @transform_1(%arg0: i32) -> (i32, i32) {
    %c0_i32 = arith.constant 0 : i32
    %c0_i32_0 = arith.constant 0 : i32
    %c0_i32_1 = arith.constant 0 : i32
    return %c0_i32, %c0_i32_0 : i32, i32
  }
  func.func @transform_2(%arg0: i32) -> (i32, i32) {
    %c0_i32 = arith.constant 0 : i32
    %c0_i32_0 = arith.constant 0 : i32
    %c0_i32_1 = arith.constant 0 : i32
    return %c0_i32, %c0_i32_0 : i32, i32
  }
  func.func @transform_3(%arg0: i32) -> (i32, i32) {
    %c0_i32 = arith.constant 0 : i32
    %c0_i32_0 = arith.constant 0 : i32
    %c0_i32_1 = arith.constant 0 : i32
    return %c0_i32, %c0_i32_0 : i32, i32
  }
  func.func @transform_4(%arg0: i32) -> (i32, i32) {
    %c0_i32 = arith.constant 0 : i32
    %c0_i32_0 = arith.constant 0 : i32
    %c0_i32_1 = arith.constant 0 : i32
    return %c0_i32, %c0_i32_0 : i32, i32
  }
  func.func @transform_5(%arg0: i32) -> (i32, i32) {
    %c0_i32 = arith.constant 0 : i32
    %c0_i32_0 = arith.constant 0 : i32
    %c0_i32_1 = arith.constant 0 : i32
    return %c0_i32, %c0_i32_0 : i32, i32
  }
  func.func @transform_6(%arg0: i32) -> (i32, i32) {
    %c0_i32 = arith.constant 0 : i32
    %c0_i32_0 = arith.constant 0 : i32
    %c0_i32_1 = arith.constant 0 : i32
    return %c0_i32, %c0_i32_0 : i32, i32
  }
  func.func @transform_7(%arg0: i32) -> (i32, i32) {
    %c0_i32 = arith.constant 0 : i32
    %c0_i32_0 = arith.constant 0 : i32
    %c0_i32_1 = arith.constant 0 : i32
    return %c0_i32, %c0_i32_0 : i32, i32
  }
  func.func @transform_8(%arg0: i32) -> (i32, i32) {
    %c0_i32 = arith.constant 0 : i32
    %c0_i32_0 = arith.constant 0 : i32
    %c0_i32_1 = arith.constant 0 : i32
    return %c0_i32, %c0_i32_0 : i32, i32
  }
  func.func @transform_9(%arg0: i32) -> (i32, i32) {
    %c0_i32 = arith.constant 0 : i32
    %c0_i32_0 = arith.constant 0 : i32
    %c0_i32_1 = arith.constant 0 : i32
    return %c0_i32, %c0_i32_0 : i32, i32
  }
  func.func @transform_10(%arg0: i32) -> (i32, i32) {
    %c0_i32 = arith.constant 0 : i32
    %c0_i32_0 = arith.constant 0 : i32
    %c0_i32_1 = arith.constant 0 : i32
    return %c0_i32, %c0_i32_0 : i32, i32
  }
  func.func @transform_11(%arg0: i32) -> (i32, i32) {
    %c0_i32 = arith.constant 0 : i32
    %c0_i32_0 = arith.constant 0 : i32
    %c0_i32_1 = arith.constant 0 : i32
    return %c0_i32, %c0_i32_0 : i32, i32
  }
  func.func @transform_12(%arg0: i32) -> (i32, i32) {
    %c0_i32 = arith.constant 0 : i32
    %c0_i32_0 = arith.constant 0 : i32
    %c0_i32_1 = arith.constant 0 : i32
    return %c0_i32, %c0_i32_0 : i32, i32
  }
  func.func @transform_13(%arg0: i32) -> (i32, i32) {
    %c0_i32 = arith.constant 0 : i32
    %c0_i32_0 = arith.constant 0 : i32
    %c0_i32_1 = arith.constant 0 : i32
    return %c0_i32, %c0_i32_0 : i32, i32
  }
  func.func @transform_14(%arg0: i32) -> (i32, i32) {
    %c0_i32 = arith.constant 0 : i32
    %c0_i32_0 = arith.constant 0 : i32
    %c0_i32_1 = arith.constant 0 : i32
    return %c0_i32, %c0_i32_0 : i32, i32
  }
  func.func @transform_15(%arg0: i32) -> (i32, i32) {
    %c0_i32 = arith.constant 0 : i32
    %c0_i32_0 = arith.constant 0 : i32
    %c0_i32_1 = arith.constant 0 : i32
    return %c0_i32, %c0_i32_0 : i32, i32
  }
  func.func @transform_16(%arg0: i32) -> (i32, i32) {
    %c0_i32 = arith.constant 0 : i32
    %c0_i32_0 = arith.constant 0 : i32
    %c0_i32_1 = arith.constant 0 : i32
    return %c0_i32, %c0_i32_0 : i32, i32
  }
  func.func @transform_17(%arg0: i32) -> (i32, i32) {
    %c0_i32 = arith.constant 0 : i32
    %c0_i32_0 = arith.constant 0 : i32
    return %arg0, %c0_i32 : i32, i32
  }
}

</mosaic_0001>

<bundles_post_ra>
// kernel: sparse_autoencoder_forward.1
= control target key start
LH: loop header
LB: loop body
LE: loop exit
PB: predicated region body
PF: predicated region fallthrough
CT: control target
= control target key end

     0   :  { %s3908_s0 = inlined_call_operand.vmem [shape: bf16[50,784], index: 0, kind: input, shape index: {}]   ;;  %s3909_s1 = inlined_call_operand.vmem [shape: bf16[784,128], index: 1, kind: input, shape index: {}]   ;;  %s3910_s2 = inlined_call_operand.vmem [shape: f32[1,128], index: 2, kind: input, shape index: {}]   ;;  %s3911_s3 = inlined_call_operand.vmem [shape: bf16[128,64], index: 3, kind: input, shape index: {}]   ;;  %s3912_s4 = inlined_call_operand.vmem [shape: f32[1,64], index: 4, kind: input, shape index: {}]   ;;  %s3913_s5 = inlined_call_operand.vmem [shape: bf16[64,12], index: 5, kind: input, shape index: {}]   ;;  %s3914_s6 = inlined_call_operand.vmem [shape: f32[1,12], index: 6, kind: input, shape index: {}]   ;;  %s3915_s7 = inlined_call_operand.vmem [shape: bf16[12,5], index: 7, kind: input, shape index: {}]   ;;  %s3916_s8 = inlined_call_operand.vmem [shape: f32[1,5], index: 8, kind: input, shape index: {}]   ;;  %s3917_s9 = inlined_call_operand.vmem [shape: bf16[5,12], index: 9, kind: input, shape index: {}]   ;;  %s3918_s10 = inlined_call_operand.vmem [shape: f32[1,12], index: 10, kind: input, shape index: {}]   ;;  %s3919_s11 = inlined_call_operand.vmem [shape: bf16[12,64], index: 11, kind: input, shape index: {}]   ;;  %s3920_s12 = inlined_call_operand.vmem [shape: f32[1,64], index: 12, kind: input, shape index: {}]   ;;  %s3921_s13 = inlined_call_operand.vmem [shape: bf16[64,128], index: 13, kind: input, shape index: {}]   ;;  %s3922_s14 = inlined_call_operand.vmem [shape: f32[1,128], index: 14, kind: input, shape index: {}]   ;;  %s3923_s15 = inlined_call_operand.vmem [shape: bf16[128,784], index: 15, kind: input, shape index: {}]   ;;  %s3924_s16 = inlined_call_operand.vmem [shape: f32[1,784], index: 16, kind: input, shape index: {}]   ;;  %s3925_s17 = inlined_call_operand.hbm [shape: f32[50,784], index: 17, kind: output, shape index: {}]  }
   0x1   :  { %3935 = sst [smem:[#allocation12_spill]] %s3908_s0 }
   0x2   :  { %3936 = sst [smem:[#allocation13_spill]] %s3909_s1 }
   0x3   :  { %3937 = sst [smem:[#allocation14_spill]] %s3925_s17 }
   0x4   :  { %22 = vsyncpa [#allocation3], 0 }
   0x5   :  { %24 = vsyncpa [#allocation3 + $0x1], 0  ;;  %s3305_s24 = smov 0   ;;  %s3307_s25 = smov 0  }
   0x6   :  { %s3309_s26 = smov 0   ;;  %s3311_s27 = smov 0  }
   0x7 LB: > { %3938 = sst [smem:[#allocation5_spill]] %s3196_s24  ;;  %s3326_s28 = sadd.s32 4294967295, %s3208_s27   ;;  %s3208_s27 = sphi %s3311_s27, %s3954_s27   ;;  %s3204_s26 = sphi %s3309_s26, %s3956_s26   ;;  %s3200_s25 = sphi %s3307_s25, %s3958_s25   ;;  %s3196_s24 = sphi %s3305_s24, %s3957_s24  }
   0x8   : > { %3939 = sst [smem:[#allocation6_spill]] %s3204_s26  ;;  %s2545_s29 = sadd.s32 4294967294, %s3208_s27  }
   0x9   : > { %3940 = sst [smem:[#allocation7_spill]] %s3208_s27  ;;  %s3330_s0 = sadd.s32 1, %s3208_s27  }
   0xa   : > { %3941 = sst [smem:[#allocation8_spill]] %s3326_s28  ;;  %s399_s30 = sadd.s32 1, %s3204_s26 }
   0xb   : > { %3942 = sst [smem:[#allocation9_spill]] %s3330_s0  ;;  %s396_s18 = ssub.s32 %s3208_s27, %s3330_s0 }
   0xc   : > { %p409_p0 = scmp.ne.s32.totalorder %s3204_s26, %s3200_s25  ;;  %p397_p1 = scmp.eq.s32.totalorder %s396_s18, 0 }
   0xd   : > { %p410_p2 = scmp.eq.s32.totalorder %s3326_s28, 1  ;;  %p415_p3 = scmp.ne.s32.totalorder %s3200_s25, %s3196_s24 }
   0xe   : > { %p416_p4 = scmp.eq.s32.totalorder %s2545_s29, 1  ;;  %p2548_p7 = scmp.ge.s32.totalorder %s3208_s27, 1 }
   0xf   : > { %s3341_s19 = scalar_select %p397_p1, %s3204_s26, %s399_s30  }
  0x10   : > { %p3343_p5 = por %p410_p2, %p409_p0  ;;  %p3347_p6 = por %p416_p4, %p415_p3 }
  0x11   : > { %3943 = sst [smem:[#allocation10_spill]] %s3341_s19  ;;  %p502_p8 = scmp.lt.s32.totalorder %s3208_s27, 3 }
  0x12   : > { %s3945_s20 = scalar_select %p3347_p6, 1, 0 }
  0x13   : > { %p503_p9 = pnand %p2548_p7, %p502_p8 }
  0x14   : > { %3946 = sst [smem:[#allocation11_spill]] %s3945_s20  ;;  %s3396_s20 = sshll.u32 (!%p503_p9), %s3326_s28, 2  ;;  %vm1069_vm0 = vcmask (!%p503_p9), 130048   ;;  %v3048_v63 = vld [vmem:[%s3911_s3] sm:$0xff] (!%p503_p9)   ;;  %vm1443_vm1 = vcmask (!%p503_p9), 523264   ;;  %vm1526_vm2 = vcmask (!%p503_p9), 1045504  }
  0x15   : > { %506 = sbr.rel (%p503_p9) target bundleno = 1941 (0x795), region = 88  ;;  %s3947_s23 = sld [smem:[#allocation13_spill]] (!%p503_p9)  ;;  %vm1519_vm3 = vcmask (!%p503_p9), 97280   ;;  %vm1596_vm4 = vcmask (!%p503_p9), 1041408   ;;  %vm1597_vm5 = vcmask (!%p503_p9), 1042432   ;;  %vm1589_vm6 = vcmask (!%p503_p9), 39936  }
  0x16   : > { %p566_p10 = scmp.lt.s32.totalorder (!%p503_p9), %s3396_s20, 6  ;;  %s3948_s28 = sld [smem:[#allocation12_spill]] (!%p503_p9) }
  0x17   : > { %s557_s24 = sand.u32 (!%p503_p9), 1, %s3200_s25  }
  0x18   : > { %s2934_s30 = smul.u32 (!%p503_p9), 224, %s557_s24  ;;  %s3847_s22 = scalar_lea.sflag (!%p503_p9), [#allocation3], %s557_s24 }
  0x1a   : > { %s3808_s21 = scalar_lea.vmem (!%p503_p9), [#allocation2], %s2934_s30 }
  0x1b   : > { %v2979_v0 = vld [vmem:[%s3947_s23 + $0x40] sm:$0xff] (!%p503_p9)   ;;  %v2983_v4 = vld [vmem:[%s3947_s23 + $0x48] sm:$0xff] (!%p503_p9)   ;;  %v2987_v8 = vld [vmem:[%s3947_s23 + $0x50] sm:$0xff] (!%p503_p9)  }
  0x1c   : > { %v2980_v1 = vld [vmem:[%s3947_s23] sm:$0xff]   ;;  %2716 = vmatprep.subr.bf16.mxu0 %v2979_v0  ;;  %v2984_v5 = vld [vmem:[%s3947_s23 + $0x8] sm:$0xff]   ;;  %v2988_v9 = vld [vmem:[%s3947_s23 + $0x10] sm:$0xff]   ;;  %s567_s19 = scalar_select %p566_p10, %s3396_s20, 6 }
  0x1d   : > { %v2981_v2 = vld [vmem:[%s3947_s23 + $0xc0] sm:$0xff]   ;;  %2717 = vmatpush3.bf16.msra.mxu0 %v2980_v1  ;;  %v2985_v6 = vld [vmem:[%s3947_s23 + $0xc8] sm:$0xff]   ;;  %v2989_v10 = vld [vmem:[%s3947_s23 + $0xd0] sm:$0xff]  }
  0x1e   : > { %v2982_v3 = vld [vmem:[%s3947_s23 + $0x80] sm:$0xff]   ;;  %2744 = vmatprep.subr.bf16.mxu1 %v2981_v2  ;;  %2718 = vmatprep.subr.bf16.mxu0 %v2983_v4  ;;  %v2986_v7 = vld [vmem:[%s3947_s23 + $0x88] sm:$0xff]   ;;  %v2990_v11 = vld [vmem:[%s3947_s23 + $0x90] sm:$0xff]   ;;  %s2935_s29 = smul.u32 28, %s567_s19  ;;  %s2470_s19 = ssub.s32 (%p3343_p5), 7, %s3396_s20 }
  0x1f   : > { %2745 = vmatpush3.bf16.msra.mxu1 %v2982_v3  ;;  %v2991_v12 = vld [vmem:[%s3947_s23 + $0x58] sm:$0xff]   ;;  %v2995_v16 = vld [vmem:[%s3947_s23 + $0x60] sm:$0xff]   ;;  %v2999_v20 = vld [vmem:[%s3947_s23 + $0x68] sm:$0xff]   ;;  %p2471_p11 = scmp.lt.s32.totalorder (%p3343_p5), %s2470_s19, 4 }
  0x20   : > { %2746 = vmatprep.subr.bf16.mxu1 %v2985_v6  ;;  %v2992_v13 = vld [vmem:[%s3947_s23 + $0x18] sm:$0xff]   ;;  %v2996_v17 = vld [vmem:[%s3947_s23 + $0x20] sm:$0xff]   ;;  %v3000_v21 = vld [vmem:[%s3947_s23 + $0x28] sm:$0xff]   ;;  %s3448_s17 = scalar_lea.vmem %s3948_s28, %s2935_s29 }
  0x21   : > { %2719 = vmatpush3.bf16.msra.mxu0 %v2984_v5  ;;  %v2993_v14 = vld [vmem:[%s3947_s23 + $0xd8] sm:$0xff]   ;;  %v2997_v18 = vld [vmem:[%s3947_s23 + $0xe0] sm:$0xff]   ;;  %v3001_v22 = vld [vmem:[%s3947_s23 + $0xe8] sm:$0xff]  }
  0x22   : > { %2720 = vmatprep.subr.bf16.mxu0 %v2987_v8  ;;  %v2994_v15 = vld [vmem:[%s3947_s23 + $0x98] sm:$0xff]   ;;  %v2998_v19 = vld [vmem:[%s3947_s23 + $0xa0] sm:$0xff]   ;;  %v3002_v23 = vld [vmem:[%s3947_s23 + $0xa8] sm:$0xff]  }
  0x23   : > { %2747 = vmatpush3.bf16.msra.mxu1 %v2986_v7  ;;  %v3003_v24 = vld [vmem:[%s3947_s23 + $0x70] sm:$0xff]   ;;  %v3007_v28 = vld [vmem:[%s3947_s23 + $0x78] sm:$0xff]   ;;  %v3012_v32 = vld [vmem:[%s3448_s17 + $0x4] ss:$28 sps:$4 sm:$0xff]  }
  0x24   : > { %2748 = vmatprep.subr.bf16.mxu1 %v2989_v10  ;;  %v3004_v25 = vld [vmem:[%s3947_s23 + $0x30] sm:$0xff]   ;;  %v3008_v29 = vld [vmem:[%s3947_s23 + $0x38] sm:$0xff]   ;;  %1108 = vmatprep.mubr.bf16.mxu0 %v3012_v32  ;;  %v3014_v34 = vld [vmem:[%s3947_s23 + $0x140] sm:$0xff]  }
  0x25   : > { %2721 = vmatpush3.bf16.msra.mxu0 %v2988_v9  ;;  %v3005_v26 = vld [vmem:[%s3947_s23 + $0xf0] sm:$0xff]   ;;  %v3009_v30 = vld [vmem:[%s3947_s23 + $0xf8] sm:$0xff]   ;;  %v3015_v35 = vld [vmem:[%s3448_s17 + $0x8] ss:$28 sps:$4 sm:$0xff]  }
  0x26   : > { %2722 = vmatprep.subr.bf16.mxu0 %v2991_v12  ;;  %v3006_v27 = vld [vmem:[%s3947_s23 + $0xb0] sm:$0xff]   ;;  %v3010_v31 = vld [vmem:[%s3448_s17] ss:$28 sps:$4 sm:$0xff]   ;;  %v3017_v36 = vld [vmem:[%s3448_s17 + $0xc] ss:$28 sps:$4 sm:$0xff]  }
  0x27   : > { %2749 = vmatpush3.bf16.msra.mxu1 %v2990_v11  ;;  %v3013_v33 = vld [vmem:[%s3947_s23 + $0xb8] sm:$0xff]   ;;  %v3018_v37 = vld [vmem:[%s3947_s23 + $0x100] sm:$0xff]   ;;  %1157 = vmatprep.mubr.bf16.mxu1 %v3017_v36  ;;  %v3019_v38 = vld [vmem:[%s3947_s23 + $0x148] sm:$0xff]  }
  0x28   : > { %2750 = vmatprep.subr.bf16.mxu1 %v2993_v14  ;;  %v3020_v39 = vld [vmem:[%s3947_s23 + $0x108] sm:$0xff]   ;;  %v3021_v40 = vld [vmem:[%s3947_s23 + $0x150] sm:$0xff]   ;;  %v3023_v42 = vld [vmem:[%s3947_s23 + $0x158] sm:$0xff]  }
  0x29   : > { %2723 = vmatpush3.bf16.msra.mxu0 %v2992_v13  ;;  %v3022_v41 = vld [vmem:[%s3947_s23 + $0x110] sm:$0xff]   ;;  %v3027_v43 = vld [vmem:[%s3448_s17 + $0x3c] ss:$28 sps:$4 sm:$0xff]   ;;  %v3025_v46 = vld [vmem:[%s3947_s23 + $0x160] sm:$0xff]  }
  0x2a   : > { %2724 = vmatprep.subr.bf16.mxu0 %v2995_v16  ;;  %v3024_v44 = vld [vmem:[%s3947_s23 + $0x118] sm:$0xff]   ;;  %v3032_v47 = vld [vmem:[%s3448_s17 + $0x44] ss:$28 sps:$4 sm:$0xff]   ;;  %v3029_v50 = vld [vmem:[%s3947_s23 + $0x168] sm:$0xff]  }
  0x2b   : > { %2751 = vmatpush3.bf16.msra.mxu1 %v2994_v15  ;;  %v3030_v45 = vld [vmem:[%s3448_s17 + $0x38] ss:$28 sps:$4 sm:$0xff]   ;;  %v3034_v48 = vld [vmem:[%s3448_s17 + $0x40] ss:$28 sps:$4 sm:$0xff]   ;;  %v3031_v52 = vld [vmem:[%s3947_s23 + $0x128] sm:$0xff]  }
  0x2c   : > { %2752 = vmatprep.subr.bf16.mxu1 %v2997_v18  ;;  %v3026_v49 = vld [vmem:[%s3947_s23 + $0x120] sm:$0xff]   ;;  %v3035_v53 = vld [vmem:[%s3947_s23 + $0x170] sm:$0xff]   ;;  %v3038_v58 = vld [vmem:[%s3947_s23 + $0x178] sm:$0xff]  }
  0x2d   : > { %2725 = vmatpush3.bf16.msra.mxu0 %v2996_v17  ;;  %v3037_v51 = vld [vmem:[%s3947_s23 + $0x180] sm:$0xff]   ;;  %v3042_v54 = vld [vmem:[%s3448_s17 + $0x14] ss:$28 sps:$4 sm:$0xff]   ;;  %v3039_v59 = vld [vmem:[%s3947_s23 + $0x138] sm:$0xff]  }
  0x2e   : > { %2726 = vmatprep.subr.bf16.mxu0 %v2999_v20  ;;  %v3043_v55 = vld [vmem:[%s3448_s17 + $0x18] ss:$28 sps:$4 sm:$0xff]   ;;  %v3044_v56 = vld [vmem:[%s3448_s17 + $0x50] ss:$28 sps:$4 sm:$0xff]   ;;  %v3047_v62 = vld [vmem:[%s3448_s17 + $0x48] ss:$28 sps:$4 sm:$0xff]  }
  0x2f   : > { %2753 = vmatpush3.bf16.msra.mxu1 %v2998_v19  ;;  %v3036_v57 = vld [vmem:[%s3947_s23 + $0x130] sm:$0xff]   ;;  %v3045_v61 = vld [vmem:[%s3448_s17 + $0x4c] ss:$28 sps:$4 sm:$0xff]   ;;  %v3051_v2 = vld [vmem:[%s3911_s3 + $0x18] sm:$0xff]  }
  0x30   : > { %2754 = vmatprep.subr.bf16.mxu1 %v3001_v22  ;;  %v3040_v60 = vld [vmem:[%s3448_s17 + $0x10] ss:$28 sps:$4 sm:$0xff]   ;;  %v3052_v3 = vld [vmem:[%s3911_s3 + $0x20] sm:$0xff]   ;;  %v3055_v6 = vld [vmem:[%s3911_s3 + $0x38] sm:$0xff]  }
  0x31   : > { %2727 = vmatpush3.bf16.msra.mxu0 %v3000_v21  ;;  %v3049_v0 = vld [vmem:[%s3911_s3 + $0x8] sm:$0xff]   ;;  %v3050_v1 = vld [vmem:[%s3911_s3 + $0x10] sm:$0xff]   ;;  %v3056_v7 = vld [vmem:[%s3913_s5] sm:$0xff]  }
  0x32   : > { %2728 = vmatprep.subr.bf16.mxu0 %v3003_v24  ;;  %v3053_v4 = vld [vmem:[%s3911_s3 + $0x28] sm:$0xff]   ;;  %v3054_v5 = vld [vmem:[%s3911_s3 + $0x30] sm:$0xff]   ;;  %v2551_v10 = vld [vmem:[%s3910_s2] ss:$0 sm:$0xff] }
  0x33   : > { %2755 = vmatpush3.bf16.msra.mxu1 %v3002_v23  ;;  %v3057_v8 = vld [vmem:[%s3913_s5 + $0x8] sm:$0xff]  }
  0x34   : > { %2756 = vmatprep.subr.bf16.mxu1 %v3005_v26 }
  0x35   : > { %2729 = vmatpush3.bf16.msra.mxu0 %v3004_v25 }
  0x36   : > { %2730 = vmatprep.subr.bf16.mxu0 %v3007_v28 }
  0x37   : > { %2757 = vmatpush3.bf16.msra.mxu1 %v3006_v27 }
  0x38   : > { %2758 = vmatprep.subr.bf16.mxu1 %v3009_v30 }
  0x39   : > { %2731 = vmatpush3.bf16.msra.mxu0 %v3008_v29 }
  0x3a   : > { %2772 = vmatprep.subr.bf16.mxu0 %v3014_v34 }
  0x3b   : > { %2759 = vmatpush3.bf16.msra.mxu1 %v3013_v33 }
  0x3c   : > { %1109 = vmatmul.mubr.bf16.vlgmr.msra.gmra.mrb[0].mxu0 %v3010_v31  ;;  %2844 = vmatprep.subr.bf16.mxu1 %v3037_v51 }
  0x3d   : > { %2773 = vmatpush3.bf16.msra.mxu0 %v3018_v37  ;;  %1116 = vmatprep.mubr.bf16.mxu0 %v3027_v43 }
  0x3e   : > { %1158 = vmatmul.mubr.bf16.vlgmr.msra.gmra.mrb[0].mxu1 %v3015_v35  ;;  %2774 = vmatprep.subr.bf16.mxu0 %v3019_v38 }
  0x3f   : > { %1165 = vmatprep.mubr.bf16.mxu1 %v3032_v47  ;;  %2845 = vmatpush3.bf16.msra.mxu1 %v3037_v51 }
  0x40   : > { %2850 = vmatprep.subr.bf16.mxu1 %v3048_v63 }
  0x41   : > { %2775 = vmatpush3.bf16.msra.mxu0 %v3020_v39 }
  0x42   : > { %2776 = vmatprep.subr.bf16.mxu0 %v3021_v40 }
  0x44   : > { %1117 = vmatmul.mubr.bf16.gmra.mrb[4].mxu0 %v3030_v45 }
  0x45   : > { %2777 = vmatpush3.bf16.msra.mxu0 %v3022_v41  ;;  %1206 = vmatprep.mubr.bf16.mxu0 %v3042_v54 }
  0x46   : > { %2778 = vmatprep.subr.bf16.mxu0 %v3023_v42  ;;  %1166 = vmatmul.mubr.bf16.gmra.mrb[4].mxu1 %v3034_v48 }
  0x47   : > { %2846 = vmatprep.mubr.msk.bf16.mxu1 %vm1069_vm0, %v3043_v55 }
  0x49   : > { %2779 = vmatpush3.bf16.msra.mxu0 %v3024_v44 }
  0x4a   : > { %2780 = vmatprep.subr.bf16.mxu0 %v3025_v46 }
  0x4d   : > { %2781 = vmatpush3.bf16.msra.mxu0 %v3026_v49 }
  0x4e   : > { %2782 = vmatprep.subr.bf16.mxu0 %v3029_v50  ;;  %2847 = vmatmul.mubr.msk.bf16.vlgmr.msra.gmra.mrb[8].mxu1 %vm1069_vm0, %v3044_v56 }
  0x4f   : > { %2851 = vmatpush3.bf16.msra.mxu1 %v3048_v63 }
  0x50   : > { %2852 = vmatprep.subr.bf16.mxu1 %v3049_v0 }
  0x51   : > { %2783 = vmatpush3.bf16.msra.mxu0 %v3031_v52 }
  0x52   : > { %2784 = vmatprep.subr.bf16.mxu0 %v3035_v53 }
  0x53   : > { %2853 = vmatpush3.bf16.msra.mxu1 %v3049_v0 }
  0x54   : > { %2854 = vmatprep.subr.bf16.mxu1 %v3050_v1 }
  0x55   : > { %2785 = vmatpush3.bf16.msra.mxu0 %v3036_v57 }
  0x56   : > { %2786 = vmatprep.subr.bf16.mxu0 %v3038_v58 }
  0x57   : > { %2855 = vmatpush3.bf16.msra.mxu1 %v3050_v1 }
  0x58   : > { %2856 = vmatprep.subr.bf16.mxu1 %v3051_v2 }
  0x59   : > { %2787 = vmatpush3.bf16.msra.mxu0 %v3039_v59 }
  0x5a   : > { %2870 = vmatprep.subr.bf16.mxu0 %v3056_v7 }
  0x5b   : > { %2857 = vmatpush3.bf16.msra.mxu1 %v3051_v2 }
  0x5c   : > { %1207 = vmatmul.mubr.bf16.vlgmr.msra.gmra.mrb[8].mxu0 %v3040_v60  ;;  %2858 = vmatprep.subr.bf16.mxu1 %v3052_v3 }
  0x5d   : > { %1214 = vmatprep.mubr.bf16.mxu0 %v3045_v61  ;;  %2871 = vmatpush3.bf16.msra.mxu0 %v3056_v7 }
  0x5e   : > { %2872 = vmatprep.subr.bf16.mxu0 %v3057_v8 }
  0x5f   : > { %2859 = vmatpush3.bf16.msra.mxu1 %v3052_v3 }
  0x60   : > { %2860 = vmatprep.subr.bf16.mxu1 %v3053_v4 }
  0x61   : > { %2873 = vmatpush3.bf16.msra.mxu0 %v3057_v8  ;;  %v3058_v8 = vld [vmem:[%s3913_s5 + $0x10] sm:$0xff]  }
  0x62   : > { %2874 = vmatprep.subr.bf16.mxu0 %v3058_v8 }
  0x63   : > { %2861 = vmatpush3.bf16.msra.mxu1 %v3053_v4 }
  0x64   : > { %1215 = vmatmul.mubr.bf16.gmra.mrb[12].mxu0 %v3047_v62  ;;  %2862 = vmatprep.subr.bf16.mxu1 %v3054_v5 }
  0x65   : > { %2875 = vmatpush3.bf16.msra.mxu0 %v3058_v8 }
  0x67   : > { %2863 = vmatpush3.bf16.msra.mxu1 %v3054_v5 }
  0x68   : > { %2864 = vmatprep.subr.bf16.mxu1 %v3055_v6 }
  0x6b   : > { %2865 = vmatpush3.bf16.msra.mxu1 %v3055_v6 }
 0x10f   : > { %v2732_v9 = vpop.f32.mrb[0].mxu0 }
 0x110   : > { %v2733_v11 = vpop.f32.mrb[1].mxu0 }
 0x111   : > { %v2734_v12 = vadd.f32 %v2733_v11, %v2732_v9  ;;  %v2735_v13 = vpop.f32.mrb[2].mxu0  ;;  %v2760_v14 = vpop.f32.mrb[0].mxu1  ;;  %v3059_v9 = vld [vmem:[%s3913_s5 + $0x18] sm:$0xff]  }
 0x112   : > { %v2736_v15 = vpop.f32.mrb[3].mxu0  ;;  %v2761_v18 = vpop.f32.mrb[1].mxu1  ;;  %2876 = vmatprep.subr.bf16.mxu0 %v3059_v9 }
 0x113   : > { %v1111_v16 = vadd.f32 %v2734_v12, %v2551_v10  ;;  %v2737_v17 = vadd.f32 %v2736_v15, %v2735_v13  ;;  %v2762_v19 = vadd.f32 %v2761_v18, %v2760_v14  ;;  %v2763_v20 = vpop.f32.mrb[2].mxu1  ;;  %2877 = vmatpush3.bf16.msra.mxu0 %v3059_v9 }
 0x114   : > { %v2764_v22 = vpop.f32.mrb[3].mxu1 }
 0x115   : > { %v1114_v21 = vadd.f32 %v2737_v17, %v2551_v10  ;;  %v1160_v23 = vadd.f32 %v2762_v19, %v1111_v16  ;;  %v2765_v24 = vadd.f32 %v2764_v22, %v2763_v20 }
 0x117   : > { %v1163_v25 = vadd.f32 %v2765_v24, %v1114_v21  ;;  %v2738_v26 = vpop.f32.mrb[4].mxu0 }
 0x118   : > { %v2739_v27 = vpop.f32.mrb[5].mxu0 }
 0x119   : > { %v2740_v28 = vadd.f32 %v2739_v27, %v2738_v26  ;;  %v2741_v29 = vpop.f32.mrb[6].mxu0  ;;  %v2766_v30 = vpop.f32.mrb[4].mxu1  ;;  %v2626_v27 = vld [vmem:[%s3914_s6] ss:$0 sm:$0xff] }
 0x11a   : > { %v2742_v31 = vpop.f32.mrb[7].mxu0  ;;  %v2767_v34 = vpop.f32.mrb[5].mxu1 }
 0x11b   : > { %v1119_v32 = vadd.f32 %v2740_v28, %v2551_v10  ;;  %v2743_v33 = vadd.f32 %v2742_v31, %v2741_v29  ;;  %v2768_v35 = vadd.f32 %v2767_v34, %v2766_v30  ;;  %v2769_v36 = vpop.f32.mrb[6].mxu1 }
 0x11c   : > { %v2770_v38 = vpop.f32.mrb[7].mxu1 }
 0x11d   : > { %v1122_v37 = vadd.f32 %v2743_v33, %v2551_v10  ;;  %v1168_v39 = vadd.f32 %v2768_v35, %v1119_v32  ;;  %v2771_v40 = vadd.f32 %v2770_v38, %v2769_v36  ;;  %v2617_v10 = vld [vmem:[%s3912_s4] ss:$0 sm:$0xff] }
 0x11f   : > { %v1171_v41 = vadd.f32 %v2771_v40, %v1122_v37 }
 0x121   : > { %v2848_v42 = vpop.f32.mrb[8].mxu1 }
 0x122   : > { %v1257_v43 = vpop.f32.mrb[9].mxu1 }
 0x123   : > { %v2849_v44 = vpop.f32.mrb[10].mxu1 }
 0x124   : > { %v1260_v45 = vpop.f32.mrb[11].mxu1 }
 0x12f   : > { %v2788_v46 = vpop.f32.mrb[8].mxu0 }
 0x130   : > { %v2789_v47 = vpop.f32.mrb[9].mxu0 }
 0x131   : > { %v2790_v48 = vadd.f32 %v2789_v47, %v2788_v46  ;;  %v2791_v49 = vpop.f32.mrb[10].mxu0 }
 0x132   : > { %v2792_v50 = vpop.f32.mrb[11].mxu0 }
 0x133   : > { %v2793_v51 = vadd.f32 %v2792_v50, %v2791_v49  ;;  %v1209_v52 = vadd.f32 %v2790_v48, %v1160_v23  ;;  %v2633_v48 = vld [vmem:[%s3916_s8] ss:$0 sm:$0xff] }
 0x135   : > { %v1258_v53 = vadd.f32 %v1257_v43, %v1209_v52  ;;  %v1212_v54 = vadd.f32 %v2793_v51, %v1163_v25  ;;  %v3060_v25 = vld [vmem:[%s3915_s7] sm:$0x3f]   ;;  %v3210_v43 = vmov 65535  }
 0x136   : > { %2932 = vmatprep.subr.msk.bf16.mxu0 %vm1526_vm2, %v3060_v25  ;;  %v1528_v26 = vsel %vm1526_vm2, %v3060_v25, 0  ;;  %v3090_v25 = vld [vmem:[%s3923_s15 + $0xe0] ss:$28 sps:$4 sm:$0xff]  }
 0x137   : > { %v1261_v55 = vadd.f32 %v1260_v45, %v1212_v54  ;;  %v2794_v56 = vpop.f32.mrb[12].mxu0  ;;  %v1272_v58 = vmax.f32 %v1258_v53, 0.0 }
 0x138   : > { %v2795_v57 = vpop.f32.mrb[13].mxu0 }
 0x139   : > { %v1273_v59 = vmax.f32 %v1261_v55, 0.0  ;;  %v2796_v60 = vadd.f32 %v2795_v57, %v2794_v56  ;;  %v2797_v61 = vpop.f32.mrb[14].mxu0 }
 0x13a   : > { %v2798_v62 = vpop.f32.mrb[15].mxu0 }
 0x13b   : > { %v1276_v63 = vpack.c.bf16 %v1273_v59, %v1272_v58  ;;  %v1217_v0 = vadd.f32 %v2796_v60, %v1168_v39  ;;  %v2799_v1 = vadd.f32 %v2798_v62, %v2797_v61  ;;  %v3061_v58 = vld [vmem:[%s3919_s11] sm:$0x3f]   ;;  %v3063_v61 = vld [vmem:[%s3921_s13 + $0x8] sm:$0xff]  }
 0x13c   : > { %v1679_v59 = vsel %vm1526_vm2, %v3061_v58, 0  ;;  %v3062_v60 = vld [vmem:[%s3921_s13] sm:$0xff]  }
 0x13d   : > { %v1266_v2 = vadd.f32 %v2848_v42, %v1217_v0  ;;  %v1220_v3 = vadd.f32 %v2799_v1, %v1171_v41  ;;  %2866 = vmatprep.mubr.bf16.mxu1 %v1276_v63  ;;  %v1581_v42 = vld [vmem:[%s3917_s9] sm:$0x7] }
 0x13e   : > { %v2637_v62 = vld [vmem:[%s3918_s10] ss:$0 sm:$0xff] }
 0x13f   : > { %v1269_v4 = vadd.f32 %v2849_v44, %v1220_v3  ;;  %v1274_v5 = vmax.f32 %v1266_v2, 0.0  ;;  %v1598_v44 = vsel %vm1596_vm4, 4294967295, %v3210_v43  ;;  %v3069_v43 = vld [vmem:[%s3923_s15 + $0x8] ss:$28 sps:$4 sm:$0xff]  }
 0x140   : > { %v1599_v45 = vsel %vm1597_vm5, %v1598_v44, 0  ;;  %v3077_v44 = vld [vmem:[%s3923_s15 + $0x44] ss:$28 sps:$4 sm:$0xff]  }
 0x141   : > { %v1275_v6 = vmax.f32 %v1269_v4, 0.0  ;;  %v1601_v46 = vand.u32 %v1599_v45, %v1581_v42  ;;  %v3075_v45 = vld [vmem:[%s3923_s15 + $0x40] ss:$28 sps:$4 sm:$0xff]  }
 0x143   : > { %v1277_v7 = vpack.c.bf16 %v1275_v6, %v1274_v5  ;;  %2888 = vmatprep.subr.bf16.mxu1 %v1601_v46 }
 0x145   : > { %2867 = vmatmul.mubr.bf16.vlgmr.msra.gmra.mrb[12].mxu1 %v1277_v7 }
 0x146   : > { %2889 = vmatpush3.bf16.msra.mxu1 %v1601_v46  ;;  %v3083_v46 = vld [vmem:[%s3923_s15 + $0x7c] ss:$28 sps:$4 sm:$0xff]  }
 0x147   : > { %2900 = vmatprep.subr.bf16.mxu1 %v3062_v60 }
 0x218   : > { %v2868_v11 = vpop.f32.mrb[12].mxu1 }
 0x219   : > { %v1392_v12 = vadd.f32 %v2868_v11, %v2617_v10  ;;  %v1383_v13 = vpop.f32.mrb[13].mxu1 }
 0x21a   : > { %v1384_v14 = vadd.f32 %v2617_v10, %v1383_v13  ;;  %v2869_v15 = vpop.f32.mrb[14].mxu1  ;;  %v3064_v13 = vld [vmem:[%s3921_s13 + $0x10] sm:$0xff]  }
 0x21b   : > { %v1395_v16 = vadd.f32 %v2869_v15, %v2617_v10  ;;  %v1386_v17 = vpop.f32.mrb[15].mxu1  ;;  %v1400_v19 = vmax.f32 %v1392_v12, 0.0  ;;  %v3066_v15 = vld [vmem:[%s3923_s15] ss:$28 sps:$4 sm:$0xff]  }
 0x21c   : > { %v1387_v18 = vadd.f32 %v2617_v10, %v1386_v17  ;;  %v1398_v21 = vmax.f32 %v1384_v14, 0.0  ;;  %v3065_v14 = vld [vmem:[%s3921_s13 + $0x18] sm:$0xff]   ;;  %v3071_v17 = vld [vmem:[%s3923_s15 + $0xc] ss:$28 sps:$4 sm:$0xff]  }
 0x21d   : > { %v1401_v20 = vmax.f32 %v1395_v16, 0.0  ;;  %v3068_v16 = vld [vmem:[%s3923_s15 + $0x4] ss:$28 sps:$4 sm:$0xff]  }
 0x21e   : > { %v1399_v22 = vmax.f32 %v1387_v18, 0.0  ;;  %v3074_v18 = vld [vmem:[%s3923_s15 + $0x3c] ss:$28 sps:$4 sm:$0xff]  }
 0x21f   : > { %v1403_v23 = vpack.c.bf16 %v1401_v20, %v1400_v19  ;;  %v3072_v19 = vld [vmem:[%s3923_s15 + $0x38] ss:$28 sps:$4 sm:$0xff]  }
 0x220   : > { %v1402_v24 = vpack.c.bf16 %v1399_v22, %v1398_v21  ;;  %v3080_v20 = vld [vmem:[%s3923_s15 + $0x74] ss:$28 sps:$4 sm:$0xff]   ;;  %v3086_v22 = vld [vmem:[%s3923_s15 + $0xac] ss:$28 sps:$4 sm:$0xff]  }
 0x221   : > { %v3078_v21 = vld [vmem:[%s3923_s15 + $0x70] ss:$28 sps:$4 sm:$0xff]  }
 0x222   : > { %2878 = vmatprep.mubr.msk.bf16.mxu0 %vm1443_vm1, %v1402_v24  ;;  %v3092_v24 = vld [vmem:[%s3923_s15 + $0xe4] ss:$28 sps:$4 sm:$0xff]  }
 0x223   : > { %2879 = vmatmul.mubr.msk.bf16.vlgmr.msra.gmra.mrb[16].mxu0 %vm1443_vm1, %v1403_v23  ;;  %v3084_v23 = vld [vmem:[%s3923_s15 + $0xa8] ss:$28 sps:$4 sm:$0xff]  }
 0x224   : > { %2883 = vmatpush3.bf16.msra.mxu0 %v1528_v26  ;;  %v3098_v26 = vld [vmem:[%s3923_s15 + $0x11c] ss:$28 sps:$4 sm:$0xff]  }
 0x225   : > { %2933 = vmatprep.subr.msk.bf16.mxu0 %vm1526_vm2, %v3061_v58  ;;  %v3110_v58 = vld [vmem:[%s3923_s15 + $0x18c] ss:$28 sps:$4 sm:$0xff]  }
 0x2f6   : > { %v2880_v28 = vpop.f32.mrb[16].mxu0 }
 0x2f7   : > { %v1493_v29 = vadd.f32 %v2880_v28, %v2626_v27  ;;  %v1484_v30 = vpop.f32.mrb[17].mxu0  ;;  %v2640_v28 = vld [vmem:[%s3920_s12] ss:$0 sm:$0xff] }
 0x2f8   : > { %v1485_v31 = vadd.f32 %v2626_v27, %v1484_v30  ;;  %v2881_v32 = vpop.f32.mrb[18].mxu0 }
 0x2f9   : > { %v1496_v33 = vadd.f32 %v2881_v32, %v2626_v27  ;;  %v1487_v34 = vpop.f32.mrb[19].mxu0  ;;  %v1501_v36 = vmax.f32 %v1493_v29, 0.0 }
 0x2fa   : > { %v1488_v35 = vadd.f32 %v2626_v27, %v1487_v34  ;;  %v1499_v38 = vmax.f32 %v1485_v31, 0.0  ;;  %v3096_v27 = vld [vmem:[%s3923_s15 + $0x118] ss:$28 sps:$4 sm:$0xff]  }
 0x2fb   : > { %v1502_v37 = vmax.f32 %v1496_v33, 0.0 }
 0x2fc   : > { %v1500_v39 = vmax.f32 %v1488_v35, 0.0 }
 0x2fd   : > { %v1504_v40 = vpack.c.bf16 %v1502_v37, %v1501_v36 }
 0x2fe   : > { %v1503_v41 = vpack.c.bf16 %v1500_v39, %v1499_v38 }
 0x300   : > { %2884 = vmatprep.mubr.msk.bf16.mxu0 %vm1519_vm3, %v1503_v41 }
 0x301   : > { %2885 = vmatmul.mubr.msk.bf16.vlgmr.msra.gmra.mrb[20].mxu0 %vm1519_vm3, %v1504_v40 }
 0x302   : > { %2895 = vmatpush3.bf16.msra.mxu0 %v1679_v59  ;;  %v3113_v59 = vld [vmem:[%s3923_s15 + $0x194] ss:$28 sps:$4 sm:$0xff]  }
 0x303   : > { %2225 = vmatprep.subr.bf16.mxu0 %v3068_v16 }
 0x3d4   : > { %v2886_v47 = vpop.f32.mrb[20].mxu0 }
 0x3d5   : > { %v1564_v49 = vpop.f32.mrb[21].mxu0  ;;  %v1573_v51 = vadd.f32 %v2886_v47, %v2633_v48  ;;  %v3081_v47 = vld [vmem:[%s3923_s15 + $0x78] ss:$28 sps:$4 sm:$0xff]  }
 0x3d6   : > { %v2887_v50 = vpop.f32.mrb[22].mxu0  ;;  %v1565_v54 = vadd.f32 %v2633_v48, %v1564_v49  ;;  %v3087_v49 = vld [vmem:[%s3923_s15 + $0xb0] ss:$28 sps:$4 sm:$0xff]  }
 0x3d7   : > { %v1576_v52 = vadd.f32 %v2887_v50, %v2633_v48  ;;  %v1567_v53 = vpop.f32.mrb[23].mxu0  ;;  %v3095_v50 = vld [vmem:[%s3923_s15 + $0xec] ss:$28 sps:$4 sm:$0xff]  }
 0x3d8   : > { %v1568_v55 = vadd.f32 %v2633_v48, %v1567_v53  ;;  %v3089_v48 = vld [vmem:[%s3923_s15 + $0xb4] ss:$28 sps:$4 sm:$0xff]   ;;  %v3099_v53 = vld [vmem:[%s3923_s15 + $0x120] ss:$28 sps:$4 sm:$0xff]  }
 0x3d9   : > { %v1580_v56 = vpack.c.bf16 %v1576_v52, %v1573_v51  ;;  %v3093_v51 = vld [vmem:[%s3923_s15 + $0xe8] ss:$28 sps:$4 sm:$0xff]  }
 0x3da   : > { %v1579_v57 = vpack.c.bf16 %v1568_v55, %v1565_v54  ;;  %v3101_v52 = vld [vmem:[%s3923_s15 + $0x124] ss:$28 sps:$4 sm:$0xff]   ;;  %v3104_v54 = vld [vmem:[%s3923_s15 + $0x154] ss:$28 sps:$4 sm:$0xff]   ;;  %v3107_v55 = vld [vmem:[%s3923_s15 + $0x15c] ss:$28 sps:$4 sm:$0xff]  }
 0x3dc   : > { %2890 = vmatprep.mubr.msk.bf16.mxu1 %vm1589_vm6, %v1579_v57  ;;  %v3105_v57 = vld [vmem:[%s3923_s15 + $0x158] ss:$28 sps:$4 sm:$0xff]  }
 0x3dd   : > { %2891 = vmatmul.mubr.msk.bf16.vlgmr.msra.gmra.mrb[16].mxu1 %vm1589_vm6, %v1580_v56  ;;  %v3102_v56 = vld [vmem:[%s3923_s15 + $0x150] ss:$28 sps:$4 sm:$0xff]  }
 0x3de   : > { %2901 = vmatpush3.bf16.msra.mxu1 %v3062_v60  ;;  %v3108_v60 = vld [vmem:[%s3923_s15 + $0x188] ss:$28 sps:$4 sm:$0xff]  }
 0x3df   : > { %2902 = vmatprep.subr.bf16.mxu1 %v3063_v61 }
 0x3e2   : > { %2903 = vmatpush3.bf16.msra.mxu1 %v3063_v61  ;;  %v3111_v61 = vld [vmem:[%s3923_s15 + $0x190] ss:$28 sps:$4 sm:$0xff]  }
 0x3e3   : > { %2904 = vmatprep.subr.bf16.mxu1 %v3064_v13 }
 0x3e6   : > { %2905 = vmatpush3.bf16.msra.mxu1 %v3064_v13 }
 0x3e7   : > { %2906 = vmatprep.subr.bf16.mxu1 %v3065_v14 }
 0x3ea   : > { %2907 = vmatpush3.bf16.msra.mxu1 %v3065_v14 }
 0x3eb   : > { %2278 = vmatprep.subr.bf16.mxu1 %v3071_v17  ;;  %v3120_v17 = vld [vmem:[%s3923_s15 + $0x4c] ss:$28 sps:$4 sm:$0xff]  }
 0x4b0   : > { %v2892_v63 = vpop.f32.mrb[16].mxu1 }
 0x4b1   : > { %v1646_v0 = vadd.f32 %v2892_v63, %v2637_v62  ;;  %v1637_v1 = vpop.f32.mrb[17].mxu1  ;;  %v3117_v63 = vld [vmem:[%s3923_s15 + $0x18] ss:$28 sps:$4 sm:$0xff]  }
 0x4b2   : > { %v1638_v2 = vadd.f32 %v2637_v62, %v1637_v1  ;;  %v2893_v3 = vpop.f32.mrb[18].mxu1  ;;  %v2644_v1 = vld [vmem:[%s3922_s14] ss:$0 sm:$0xff] }
 0x4b3   : > { %v1649_v4 = vadd.f32 %v2893_v3, %v2637_v62  ;;  %v1640_v5 = vpop.f32.mrb[19].mxu1  ;;  %v1654_v7 = vmax.f32 %v1646_v0, 0.0  ;;  %v3211_v0 = vmov 0  }
 0x4b4   : > { %v1641_v6 = vadd.f32 %v2637_v62, %v1640_v5  ;;  %v1652_v9 = vmax.f32 %v1638_v2, 0.0  ;;  %v3116_v62 = vld [vmem:[%s3923_s15 + $0x14] ss:$28 sps:$4 sm:$0xff]  }
 0x4b5   : > { %v1655_v8 = vmax.f32 %v1649_v4, 0.0 }
 0x4b6   : > { %v1653_v10 = vmax.f32 %v1641_v6, 0.0 }
 0x4b7   : > { %v1657_v11 = vpack.c.bf16 %v1655_v8, %v1654_v7 }
 0x4b8   : > { %v1656_v12 = vpack.c.bf16 %v1653_v10, %v1652_v9 }
 0x4ba   : > { %2896 = vmatprep.mubr.msk.bf16.mxu0 %vm1519_vm3, %v1656_v12 }
 0x4bb   : > { %2897 = vmatmul.mubr.msk.bf16.vlgmr.msra.gmra.mrb[24].mxu0 %vm1519_vm3, %v1657_v11 }
 0x4bc   : > { %2226 = vmatpush1.bf16.msra.mxu0 %v3066_v15  ;;  %2257 = vmatprep.mubr.bf16.mxu0 %v3211_v0  ;;  %v3114_v15 = vld [vmem:[%s3923_s15 + $0x10] ss:$28 sps:$4 sm:$0xff]  }
 0x4bd   : > { %2227 = vmatprep.subr.bf16.mxu0 %v3074_v18  ;;  %v3121_v18 = vld [vmem:[%s3923_s15 + $0x50] ss:$28 sps:$4 sm:$0xff]  }
 0x4c0   : > { %2228 = vmatpush1.bf16.msra.mxu0 %v3072_v19  ;;  %v3118_v19 = vld [vmem:[%s3923_s15 + $0x48] ss:$28 sps:$4 sm:$0xff]  }
 0x4c1   : > { %2229 = vmatprep.subr.bf16.mxu0 %v3080_v20  ;;  %v3124_v20 = vld [vmem:[%s3923_s15 + $0x84] ss:$28 sps:$4 sm:$0xff]  }
 0x4c4   : > { %2230 = vmatpush1.bf16.msra.mxu0 %v3078_v21  ;;  %v3125_v21 = vld [vmem:[%s3923_s15 + $0x88] ss:$28 sps:$4 sm:$0xff]  }
 0x4c5   : > { %2231 = vmatprep.subr.bf16.mxu0 %v3086_v22  ;;  %v3122_v22 = vld [vmem:[%s3923_s15 + $0x80] ss:$28 sps:$4 sm:$0xff]  }
 0x4c8   : > { %2232 = vmatpush1.bf16.msra.mxu0 %v3084_v23  ;;  %v3128_v23 = vld [vmem:[%s3923_s15 + $0xbc] ss:$28 sps:$4 sm:$0xff]  }
 0x4c9   : > { %2233 = vmatprep.subr.bf16.mxu0 %v3092_v24  ;;  %v3129_v24 = vld [vmem:[%s3923_s15 + $0xc0] ss:$28 sps:$4 sm:$0xff]  }
 0x4cc   : > { %2234 = vmatpush1.bf16.msra.mxu0 %v3090_v25  ;;  %v3126_v25 = vld [vmem:[%s3923_s15 + $0xb8] ss:$28 sps:$4 sm:$0xff]  }
 0x4cd   : > { %2235 = vmatprep.subr.bf16.mxu0 %v3098_v26  ;;  %v3132_v26 = vld [vmem:[%s3923_s15 + $0xf4] ss:$28 sps:$4 sm:$0xff]  }
 0x4d0   : > { %2236 = vmatpush1.bf16.msra.mxu0 %v3096_v27  ;;  %v3133_v27 = vld [vmem:[%s3923_s15 + $0xf8] ss:$28 sps:$4 sm:$0xff]  }
 0x4d1   : > { %2237 = vmatprep.subr.bf16.mxu0 %v3104_v54 }
 0x4d4   : > { %2238 = vmatpush1.bf16.msra.mxu0 %v3102_v56 }
 0x4d5   : > { %2239 = vmatprep.subr.bf16.mxu0 %v3110_v58 }
 0x4d8   : > { %2240 = vmatpush1.bf16.msra.mxu0 %v3108_v60 }
 0x4d9   : > { %2331 = vmatprep.subr.bf16.mxu0 %v3116_v62 }
 0x58e   : > { %v2898_v29 = vpop.f32.mrb[24].mxu0 }
 0x58f   : > { %v1724_v30 = vadd.f32 %v2898_v29, %v2640_v28  ;;  %v1715_v31 = vpop.f32.mrb[25].mxu0  ;;  %v3136_v29 = vld [vmem:[%s3923_s15 + $0x12c] ss:$28 sps:$4 sm:$0xff]  }
 0x590   : > { %v1716_v32 = vadd.f32 %v2640_v28, %v1715_v31  ;;  %v2899_v33 = vpop.f32.mrb[26].mxu0  ;;  %v3134_v31 = vld [vmem:[%s3923_s15 + $0x128] ss:$28 sps:$4 sm:$0xff]  }
 0x591   : > { %v1727_v34 = vadd.f32 %v2899_v33, %v2640_v28  ;;  %v1718_v35 = vpop.f32.mrb[27].mxu0  ;;  %v1732_v37 = vmax.f32 %v1724_v30, 0.0  ;;  %v3137_v30 = vld [vmem:[%s3923_s15 + $0x130] ss:$28 sps:$4 sm:$0xff]   ;;  %v3141_v33 = vld [vmem:[%s3923_s15 + $0x168] ss:$28 sps:$4 sm:$0xff]  }
 0x592   : > { %v1719_v36 = vadd.f32 %v2640_v28, %v1718_v35  ;;  %v1730_v39 = vmax.f32 %v1716_v32, 0.0  ;;  %v3130_v28 = vld [vmem:[%s3923_s15 + $0xf0] ss:$28 sps:$4 sm:$0xff]   ;;  %v3140_v32 = vld [vmem:[%s3923_s15 + $0x164] ss:$28 sps:$4 sm:$0xff]  }
 0x593   : > { %v1733_v38 = vmax.f32 %v1727_v34, 0.0  ;;  %v3138_v34 = vld [vmem:[%s3923_s15 + $0x160] ss:$28 sps:$4 sm:$0xff]  }
 0x594   : > { %v1731_v40 = vmax.f32 %v1719_v36, 0.0  ;;  %v3144_v35 = vld [vmem:[%s3923_s15 + $0x19c] ss:$28 sps:$4 sm:$0xff]  }
 0x595   : > { %v1735_v41 = vpack.c.bf16 %v1733_v38, %v1732_v37  ;;  %v3145_v36 = vld [vmem:[%s3923_s15 + $0x1a0] ss:$28 sps:$4 sm:$0xff]   ;;  %v3142_v37 = vld [vmem:[%s3923_s15 + $0x198] ss:$28 sps:$4 sm:$0xff]   ;;  %v1902_v38 = vlaneseq }
 0x596   : > { %v1734_v42 = vpack.c.bf16 %v1731_v40, %v1730_v39 }
 0x597   : > { %v3797_v39 = vshrl.u32 %v1902_v38, 7 }
 0x598   : > { %2908 = vmatprep.mubr.msk.bf16.mxu1 %vm1443_vm1, %v1734_v42  ;;  %v1900_v42 = vld [vmem:[%s3924_s16] sm:$0x7f] }
 0x599   : > { %2909 = vmatmul.mubr.msk.bf16.vlgmr.msra.gmra.mrb[20].mxu1 %vm1443_vm1, %v1735_v41  ;;  %v1904_v40 = vsub.s32 0, %v3797_v39  ;;  %v1912_v41 = vsub.s32 2, %v3797_v39 }
 0x59a   : > { %2279 = vmatpush1.bf16.msra.mxu1 %v3069_v43  ;;  %2310 = vmatprep.mubr.bf16.mxu1 %v3211_v0  ;;  %v1908_v43 = vsub.s32 1, %v3797_v39 }
 0x59b   : > { %2280 = vmatprep.subr.bf16.mxu1 %v3077_v44  ;;  %v1916_v44 = vsub.s32 3, %v3797_v39 }
 0x59e   : > { %2281 = vmatpush1.bf16.msra.mxu1 %v3075_v45  ;;  %v1905_v45 = vrot.slane %v1900_v42, %v1904_v40 }
 0x59f   : > { %2282 = vmatprep.subr.bf16.mxu1 %v3083_v46  ;;  %v1913_v46 = vrot.slane %v1900_v42, %v1912_v41 }
 0x5a2   : > { %2283 = vmatpush1.bf16.msra.mxu1 %v3081_v47  ;;  %v1909_v47 = vrot.slane %v1900_v42, %v1908_v43 }
 0x5a3   : > { %2284 = vmatprep.subr.bf16.mxu1 %v3089_v48  ;;  %v1917_v48 = vrot.slane %v1900_v42, %v1916_v44 }
 0x5a6   : > { %2285 = vmatpush1.bf16.msra.mxu1 %v3087_v49 }
 0x5a7   : > { %2286 = vmatprep.subr.bf16.mxu1 %v3095_v50 }
 0x5aa   : > { %2287 = vmatpush1.bf16.msra.mxu1 %v3093_v51 }
 0x5ab   : > { %2288 = vmatprep.subr.bf16.mxu1 %v3101_v52 }
 0x5ae   : > { %2289 = vmatpush1.bf16.msra.mxu1 %v3099_v53 }
 0x5af   : > { %2290 = vmatprep.subr.bf16.mxu1 %v3107_v55 }
 0x5b2   : > { %2291 = vmatpush1.bf16.msra.mxu1 %v3105_v57 }
 0x5b3   : > { %2292 = vmatprep.subr.bf16.mxu1 %v3113_v59 }
 0x5b6   : > { %2293 = vmatpush1.bf16.msra.mxu1 %v3111_v61 }
 0x5b7   : > { %2912 = vmatprep.subr.bf16.mxu1 %v3117_v63 }
 0x66c   : > { %v2910_v2 = vpop.f32.mrb[20].mxu1 }
 0x66d   : > { %v1824_v3 = vadd.f32 %v2910_v2, %v2644_v1  ;;  %v1815_v4 = vpop.f32.mrb[21].mxu1 }
 0x66e   : > { %v1816_v5 = vadd.f32 %v2644_v1, %v1815_v4  ;;  %v2911_v6 = vpop.f32.mrb[22].mxu1 }
 0x66f   : > { %v1827_v7 = vadd.f32 %v2911_v6, %v2644_v1  ;;  %v1818_v8 = vpop.f32.mrb[23].mxu1  ;;  %v1832_v10 = vmax.f32 %v1824_v3, 0.0 }
 0x670   : > { %v1819_v9 = vadd.f32 %v2644_v1, %v1818_v8  ;;  %v1830_v12 = vmax.f32 %v1816_v5, 0.0 }
 0x671   : > { %v1833_v11 = vmax.f32 %v1827_v7, 0.0 }
 0x672   : > { %v1831_v13 = vmax.f32 %v1819_v9, 0.0 }
 0x673   : > { %v3720_v14 = vpack.c.bf16 %v1833_v11, %v1832_v10 }
 0x674   : > { %v1834_v16 = vpack.c.bf16 %v1831_v13, %v1830_v12 }
 0x676   : > { %2258 = vmatmul.mubr.bf16.vlgmr.msra.gmra.mrb[28].mxu0 %v1834_v16  ;;  %2311 = vmatmul.mubr.bf16.vlgmr.msra.gmra.mrb[24].mxu1 %v1834_v16 }
 0x677   : > { %2332 = vmatpush1.bf16.msra.mxu0 %v3114_v15  ;;  %2913 = vmatpush3.bf16.msra.mxu1 %v3117_v63 }
 0x678   : > { %2333 = vmatprep.subr.bf16.mxu0 %v3120_v17  ;;  %2914 = vmatprep.subr.bf16.mxu1 %v3121_v18  ;;  %v1920_v17 = vsub.s32 4, %v3797_v39 }
 0x679   : > { %2267 = vmatprep.mubr.bf16.mxu0 %v3211_v0  ;;  %2320 = vmatprep.mubr.bf16.mxu1 %v3211_v0 }
 0x67b   : > { %2334 = vmatpush1.bf16.msra.mxu0 %v3118_v19  ;;  %2915 = vmatpush3.bf16.msra.mxu1 %v3121_v18  ;;  %v1928_v18 = vsub.s32 6, %v3797_v39  ;;  %v1924_v19 = vsub.s32 5, %v3797_v39 }
 0x67c   : > { %2335 = vmatprep.subr.bf16.mxu0 %v3124_v20  ;;  %2916 = vmatprep.subr.bf16.mxu1 %v3125_v21  ;;  %v1921_v20 = vrot.slane %v1900_v42, %v1920_v17 }
 0x67e   : > { %2268 = vmatmul.mubr.bf16.gmra.mrb[32].mxu0 %v3720_v14  ;;  %2321 = vmatmul.mubr.bf16.gmra.mrb[28].mxu1 %v3720_v14 }
 0x67f   : > { %2336 = vmatpush1.bf16.msra.mxu0 %v3122_v22  ;;  %2917 = vmatpush3.bf16.msra.mxu1 %v3125_v21  ;;  %v1929_v21 = vrot.slane %v1900_v42, %v1928_v18  ;;  %v1925_v22 = vrot.slane %v1900_v42, %v1924_v19 }
 0x680   : > { %2928 = vmatprep.mubr.bf16.mxu1 %v1834_v16  ;;  %2337 = vmatprep.subr.bf16.mxu0 %v3128_v23 }
 0x681   : > { %2918 = vmatprep.subr.bf16.mxu1 %v3129_v24  ;;  %2363 = vmatprep.mubr.bf16.mxu0 %v3211_v0 }
 0x683   : > { %2338 = vmatpush1.bf16.msra.mxu0 %v3126_v25  ;;  %2919 = vmatpush3.bf16.msra.mxu1 %v3129_v24 }
 0x684   : > { %2339 = vmatprep.subr.bf16.mxu0 %v3132_v26  ;;  %2920 = vmatprep.subr.bf16.mxu1 %v3133_v27 }
 0x687   : > { %2340 = vmatpush1.bf16.msra.mxu0 %v3130_v28  ;;  %2921 = vmatpush3.bf16.msra.mxu1 %v3133_v27 }
 0x688   : > { %2341 = vmatprep.subr.bf16.mxu0 %v3136_v29  ;;  %2922 = vmatprep.subr.bf16.mxu1 %v3137_v30 }
 0x68b   : > { %2342 = vmatpush1.bf16.msra.mxu0 %v3134_v31  ;;  %2923 = vmatpush3.bf16.msra.mxu1 %v3137_v30 }
 0x68c   : > { %2343 = vmatprep.subr.bf16.mxu0 %v3140_v32  ;;  %2924 = vmatprep.subr.bf16.mxu1 %v3141_v33 }
 0x68f   : > { %2344 = vmatpush1.bf16.msra.mxu0 %v3138_v34  ;;  %2925 = vmatpush3.bf16.msra.mxu1 %v3141_v33 }
 0x690   : > { %2345 = vmatprep.subr.bf16.mxu0 %v3144_v35  ;;  %2926 = vmatprep.subr.bf16.mxu1 %v3145_v36 }
 0x693   : > { %2346 = vmatpush1.bf16.msra.mxu0 %v3142_v37  ;;  %2927 = vmatpush3.bf16.msra.mxu1 %v3145_v36 }
 0x696   : > { %2364 = vmatmul.mubr.bf16.vlgmr.msra.gmra.mrb[36].mxu0 %v1834_v16  ;;  %2929 = vmatmul.mubr.bf16.vlgmr.msra.gmra.mrb[32].mxu1 %v3720_v14 }
 0x697   : > { %2373 = vmatprep.mubr.bf16.mxu0 %v3211_v0 }
 0x69e   : > { %2374 = vmatmul.mubr.bf16.gmra.mrb[40].mxu0 %v3720_v14 }
 0x749   : > { %v2259_v49 = vpop.f32.mrb[28].mxu0  ;;  %v2312_v50 = vpop.f32.mrb[24].mxu1 }
 0x74a   : > { %v2260_v51 = vadd.f32 %v2259_v49, %v1905_v45  ;;  %v2313_v52 = vadd.f32 %v2312_v50, %v1913_v46  ;;  %v2261_v53 = vpop.f32.mrb[29].mxu0  ;;  %v2314_v54 = vpop.f32.mrb[25].mxu1 }
 0x74b   : > { %v2262_v55 = vadd.f32 %v2261_v53, %v1909_v47  ;;  %v2315_v56 = vadd.f32 %v2314_v54, %v1917_v48  ;;  %v2263_v57 = vpop.f32.mrb[30].mxu0  ;;  %v2316_v58 = vpop.f32.mrb[26].mxu1 }
 0x74c   : > { %2433 = vst [vmem:[%s3808_s21] sm:$0xff] %v2260_v51  ;;  %2435 = vst [vmem:[%s3808_s21 + $0x10] sm:$0xff] %v2313_v52  ;;  %v2264_v59 = vadd.f32 %v2263_v57, %v1905_v45  ;;  %v2317_v60 = vadd.f32 %v2316_v58, %v1913_v46  ;;  %v2265_v61 = vpop.f32.mrb[31].mxu0  ;;  %v2318_v62 = vpop.f32.mrb[27].mxu1 }
 0x74d   : > { %2434 = vst [vmem:[%s3808_s21 + $0x8] sm:$0xff] %v2262_v55  ;;  %2436 = vst [vmem:[%s3808_s21 + $0x18] sm:$0xff] %v2315_v56  ;;  %v2266_v63 = vadd.f32 %v2265_v61, %v1909_v47  ;;  %v2319_v0 = vadd.f32 %v2318_v62, %v1917_v48 }
 0x74e   : > { %2440 = vst [vmem:[%s3808_s21 + $0x38] sm:$0xff] %v2264_v59  ;;  %2442 = vst [vmem:[%s3808_s21 + $0x48] sm:$0xff] %v2317_v60 }
 0x74f   : > { %2441 = vst [vmem:[%s3808_s21 + $0x40] sm:$0xff] %v2266_v63  ;;  %2443 = vst [vmem:[%s3808_s21 + $0x50] sm:$0xff] %v2319_v0 }
 0x751   : > { %v2269_v1 = vpop.f32.mrb[32].mxu0  ;;  %v2322_v2 = vpop.f32.mrb[28].mxu1 }
 0x752   : > { %v2270_v3 = vadd.f32 %v2269_v1, %v1905_v45  ;;  %v2323_v4 = vadd.f32 %v2322_v2, %v1913_v46  ;;  %v2271_v5 = vpop.f32.mrb[33].mxu0  ;;  %v2324_v6 = vpop.f32.mrb[29].mxu1 }
 0x753   : > { %v2272_v7 = vadd.f32 %v2271_v5, %v1909_v47  ;;  %v2325_v8 = vadd.f32 %v2324_v6, %v1917_v48  ;;  %v2273_v9 = vpop.f32.mrb[34].mxu0  ;;  %v2326_v10 = vpop.f32.mrb[30].mxu1 }
 0x754   : > { %2447 = vst [vmem:[%s3808_s21 + $0x70] sm:$0xff] %v2270_v3  ;;  %2449 = vst [vmem:[%s3808_s21 + $0x80] sm:$0xff] %v2323_v4  ;;  %v2274_v11 = vadd.f32 %v2273_v9, %v1905_v45  ;;  %v2327_v12 = vadd.f32 %v2326_v10, %v1913_v46  ;;  %v2275_v13 = vpop.f32.mrb[35].mxu0  ;;  %v2328_v14 = vpop.f32.mrb[31].mxu1 }
 0x755   : > { %2448 = vst [vmem:[%s3808_s21 + $0x78] sm:$0xff] %v2272_v7  ;;  %2450 = vst [vmem:[%s3808_s21 + $0x88] sm:$0xff] %v2325_v8  ;;  %v2276_v15 = vadd.f32 %v2275_v13, %v1909_v47  ;;  %v2329_v16 = vadd.f32 %v2328_v14, %v1917_v48 }
 0x756   : > { %2454 = vst [vmem:[%s3808_s21 + $0xa8] sm:$0xff] %v2274_v11  ;;  %2456 = vst [vmem:[%s3808_s21 + $0xb8] sm:$0xff] %v2327_v12 }
 0x757   : > { %2455 = vst [vmem:[%s3808_s21 + $0xb0] sm:$0xff] %v2276_v15  ;;  %2457 = vst [vmem:[%s3808_s21 + $0xc0] sm:$0xff] %v2329_v16 }
 0x769   : > { %v2365_v23 = vpop.f32.mrb[36].mxu0  ;;  %v2930_v24 = vpop.f32.mrb[32].mxu1 }
 0x76a   : > { %v2366_v25 = vadd.f32 %v2365_v23, %v1921_v20  ;;  %v2427_v26 = vadd.f32 %v2930_v24, %v1929_v21  ;;  %v2367_v27 = vpop.f32.mrb[37].mxu0  ;;  %v2418_v28 = vpop.f32.mrb[33].mxu1 }
 0x76b   : > { %v2368_v29 = vadd.f32 %v2367_v27, %v1925_v22  ;;  %v2419_v30 = vadd.f32 %v2418_v28, %v1929_v21  ;;  %v2369_v31 = vpop.f32.mrb[38].mxu0  ;;  %v2931_v32 = vpop.f32.mrb[34].mxu1 }
 0x76c   : > { %2437 = vst [vmem:[%s3808_s21 + $0x20] sm:$0xff] %v2366_v25  ;;  %2453 = vst.msk [vmem:[%s3808_s21 + $0xa0] sm:$0xff] %vm1069_vm0, %v2427_v26  ;;  %v2370_v33 = vadd.f32 %v2369_v31, %v1921_v20  ;;  %v2430_v34 = vadd.f32 %v2931_v32, %v1929_v21  ;;  %v2371_v35 = vpop.f32.mrb[39].mxu0  ;;  %v2421_v36 = vpop.f32.mrb[35].mxu1 }
 0x76d   : > { %2438 = vst [vmem:[%s3808_s21 + $0x28] sm:$0xff] %v2368_v29  ;;  %2439 = vst.msk [vmem:[%s3808_s21 + $0x30] sm:$0xff] %vm1069_vm0, %v2419_v30  ;;  %v2372_v37 = vadd.f32 %v2371_v35, %v1925_v22  ;;  %v2422_v38 = vadd.f32 %v2421_v36, %v1929_v21 }
 0x76e   : > { %2444 = vst [vmem:[%s3808_s21 + $0x58] sm:$0xff] %v2370_v33  ;;  %2460 = vst.msk [vmem:[%s3808_s21 + $0xd8] sm:$0xff] %vm1069_vm0, %v2430_v34 }
 0x76f   : > { %2445 = vst [vmem:[%s3808_s21 + $0x60] sm:$0xff] %v2372_v37  ;;  %2446 = vst.msk [vmem:[%s3808_s21 + $0x68] sm:$0xff] %vm1069_vm0, %v2422_v38 }
 0x771   : > { %v2375_v39 = vpop.f32.mrb[40].mxu0  ;;  %2468 = sbr.rel (!%p3343_p5) target bundleno = 1941 (0x795), region = 92 }
 0x772   : > { %v2376_v40 = vadd.f32 %v2375_v39, %v1921_v20  ;;  %v2377_v41 = vpop.f32.mrb[41].mxu0 }
 0x773   : > { %v2378_v42 = vadd.f32 %v2377_v41, %v1925_v22  ;;  %v2379_v43 = vpop.f32.mrb[42].mxu0 }
 0x774   : > { %2451 = vst [vmem:[%s3808_s21 + $0x90] sm:$0xff] %v2376_v40  ;;  %v2380_v44 = vadd.f32 %v2379_v43, %v1921_v20  ;;  %v2381_v45 = vpop.f32.mrb[43].mxu0 }
 0x775   : > { %2452 = vst [vmem:[%s3808_s21 + $0x98] sm:$0xff] %v2378_v42  ;;  %v2382_v46 = vadd.f32 %v2381_v45, %v1925_v22 }
 0x776   : > { %2458 = vst [vmem:[%s3808_s21 + $0xc8] sm:$0xff] %v2380_v44 }
 0x777   : > { %2459 = vst [vmem:[%s3808_s21 + $0xd0] sm:$0xff] %v2382_v46 }
 0x778   : > { %s3960_s19 = smov (!%p2471_p11, %s2470_s19), 4 }
 0x779   : > { %s3852_s18 = smul.u32 896, %s3960_s19 }
 0x77b   : > { %s2476_s27 = ssub.s32 3584, %s3852_s18 }
 0x77c   : > { %2477 = vsyncadd %s3847_s22, %s2476_s27  ;;  %s3949_s26 = sld [smem:[#allocation8_spill]]  ;;  %p2710_p12 = scmp.ne.s32.totalorder %s3852_s18, 0 }
 0x77d   : > { %s2483_s0 = sshll.u32 %s3808_s21, 4  ;;  %s3950_s28 = sld [smem:[#allocation14_spill]]  ;;  %s3864_s0 = int_to_ptr.vmem [resolvable:$true] %s2483_s0 }
 0x77e   : > { %s3146_s20 = scalar_lea.vmem %s3864_s0, %s3852_s18  ;;  %s3212_s30 = smov [#allocation2]  }
 0x77f   : > { %p3147_p13 = scmp.ne.s32.totalorder %s3864_s0, %s3146_s20  ;;  %s3150_s19 = sshll.u32 %s3212_s30, 4  ;;  %s3151_s19 = int_to_ptr.vmem [resolvable:$false] %s3150_s19 }
 0x780   : > { %s3152_s27 = scalar_lea.vmem %s3151_s19, 7168  ;;  %p3153_p2 = scmp.lt.s32.totalorder %s3864_s0, %s3151_s19 }
 0x781   : > { %p3148_p0 = pnand %p3147_p13, %p2710_p12  ;;  %p3154_p3 = scmp.lt.s32.totalorder %s3152_s27, %s3146_s20 }
 0x782   : > { %s2936_s17 = smul.u32 3584, %s3949_s26 }
 0x783   : > { %p3149_p1 = pneg %p3148_p0  ;;  %p3155_p4 = por %p3154_p3, %p3153_p2 }
 0x784   : > { %s3862_s29 = scalar_lea.hbm %s3950_s28, %s2936_s17 }
 0x785   : > { %p3156_p5 = pnand %p3155_p4, %p3149_p1 }
 0x787   : > { %3159 = shalt.err (!%p3156_p5)
}
 0x788   : > { %s3160_s21 = scalar_lea.hbm %s3862_s29, %s3852_s18  ;;  %s3164_s1 = scalar_lea.hbm %s3950_s28, 6272 }
 0x789   : > { %p3161_p7 = scmp.ne.s32.totalorder %s3862_s29, %s3160_s21  ;;  %p3165_p10 = scmp.lt.u32.totalorder %s3862_s29, %s3950_s28 }
 0x78a   : > { %p3166_p11 = scmp.lt.u32.totalorder %s3164_s1, %s3160_s21  ;;  %p3168_p0 = scmp.lt.u32.totalorder %s3160_s21, %s3862_s29 }
 0x78b   : > { %p3162_p8 = pnand %p3161_p7, %p2710_p12 }
 0x78c   : > { %p3167_p13 = por %p3166_p11, %p3165_p10 }
 0x78d   : > { %p3163_p9 = pneg %p3162_p8 }
 0x78e   : > { %p3169_p1 = por %p3168_p0, %p3167_p13 }
 0x790   : > { %p3170_p2 = pnand %p3169_p1, %p3163_p9 }
 0x792   : > { %3173 = shalt.err (!%p3170_p2)
}
 0x793   : > { %s3213_s30 = smov 896   ;;  %s3214_s19 = smov 56  }
 0x794   : > { %2489 = dma.vmem_to_hbm [thread:$0]  (%p2710_p12), %s3864_s0, %s3852_s18, %s3862_s29, %s3847_s22, %s3213_s30, %s3213_s30, %s3214_s19  }
 0x795 PF: > { %s3951_s27 = sld [smem:[#allocation7_spill]]  ;;  %s3952_s26 = sld [smem:[#allocation5_spill]] }
 0x79b   : > { %p2942_p3 = scmp.ge.s32.totalorder %s3951_s27, 2  ;;  %s2498_s1 = sand.u32 1, %s3952_s26  }
 0x79c   : > { %s2499_s21 = scalar_lea.sflag [#allocation3], %s2498_s1 }
 0x79d   : > { %p2939_p4 = pnand %p2942_p3, %p3347_p6 }
 0x79f   : > { %3191 = dma.done.wait (!%p2939_p4), %s2499_s21, 3584  }
 0x7a0   : > { %3193 = vsyncadd (!%p2939_p4), %s2499_s21, 4294963712  ;;  %s3954_s27 = sld [smem:[#allocation9_spill]]  ;;  %s3955_s20 = sld [smem:[#allocation6_spill]] }
 0x7a1   : > { %s3956_s26 = sld [smem:[#allocation10_spill]]  ;;  %s3957_s24 = smov %s3200_s25 }
 0x7a6   : > { %p27_p5 = scmp.ge.s32.totalorder %s3954_s27, 4   ;;  %s3958_s25 = smov %s3955_s20 }
 0x7a8   :  { %29 = sbr.rel (!%p27_p5) target bundleno = 7 (0x7), region = 123 }
 0x7af   :  { %2504 = vsyncpa [#allocation3], 1 }
 0x7b0   :  { %2506 = vsyncpa [#allocation3 + $0x1], 1 }

</bundles_post_ra>
